<compile_context>
chip_gen: v6e
topology: v6e:2x2x1
jax: 0.10.0
libtpu: 0.0.40
codegen_flags: <defaults>
</compile_context>

<pallas_src>
import jax
import jax.numpy as jnp
from jax.experimental import pallas as pl
from jax.experimental.pallas import tpu as pltpu

IN_DIM = 15
K_DIM = IN_DIM + 1     # ones column folds the trunk bias into the matmul
OUT_DIM = 1            # per head; two heads total
MAX_TILE_N = 4096      # rows per grid step (v7x VMEM-safe, amortizes step cost)
ROW_ALIGN = 512        # multiple of both 8 (sublane) and 128 (lane)


def _round_up(n, m):
    return ((n + m - 1) // m) * m


def _mtl_kernel(x_ref, wt_ref, vh_ref, bh_ref, ot_ref):
    """One row-tile of the SharedPrivateMTL forward.

    x_ref  : (TILE_N, 16) bf16   input rows with a trailing ones column
    wt_ref : (16, 3H)     bf16   [W_shared^T | W_priv1^T | W_priv2^T ; biases]
    vh_ref : (2, 3H)      bf16   fused head weights (row 0 -> out1, row 1 -> out2)
    bh_ref : (2, 1)       f32    head biases
    ot_ref : (2, TILE_N)  f32    transposed outputs (lane-dense stores)
    """
    # Fused trunk (bias folded in): bf16 MXU matmul with f32 accumulation.
    t = jnp.dot(x_ref[...], wt_ref[...],
                preferred_element_type=jnp.float32)          # (TILE_N, 3H) f32

    # bf16 tanh (EUP bf16 path on v6e/v7x); keep activations bf16 for the MXU.
    a = jnp.tanh(t.astype(jnp.bfloat16))                     # (TILE_N, 3H) bf16

    # Fused heads, forced into the small-M form (2, 3H) @ (3H, TILE_N):
    # the transpose goes to the XLU, the matmul costs ~3H/256 MXU passes.
    z = jnp.dot(vh_ref[...], a.T,
                preferred_element_type=jnp.float32)          # (2, TILE_N) f32

    ot_ref[...] = jax.nn.sigmoid(z + bh_ref[...]).astype(ot_ref.dtype)


def prepare_params(raw):
    """Repack torch-layout parameters into the fused bf16 kernel layout."""
    ws, bs, wp1, bp1, wp2, bp2, w1, b1, w2, b2 = raw
    h = ws.shape[0]
    # Trunk: one (15, 3H) weight; append the bias as a 16th row (ones column
    # on x picks it up), then cast to bf16 for the MXU.
    wt = jnp.concatenate([ws.T, wp1.T, wp2.T], axis=1)               # (15, 3H)
    bt = jnp.concatenate([bs, bp1, bp2])[None, :]                    # (1, 3H)
    wt_aug = jnp.concatenate([wt, bt], axis=0).astype(jnp.bfloat16)  # (16, 3H)
    # Heads: express fc1/fc2 against the fused 3H activation with zero blocks
    # (head1 never sees a_p2, head2 never sees a_p1).
    zeros = jnp.zeros((OUT_DIM, h), dtype=w1.dtype)
    v1 = jnp.concatenate([w1[:, :h], w1[:, h:], zeros], axis=1)      # (1, 3H)
    v2 = jnp.concatenate([w2[:, :h], zeros, w2[:, h:]], axis=1)      # (1, 3H)
    vh = jnp.concatenate([v1, v2], axis=0).astype(jnp.bfloat16)      # (2, 3H)
    bh = jnp.stack([b1, b2]).reshape(2, 1).astype(jnp.float32)       # (2, 1)
    return wt_aug, vh, bh


def shared_private_mtl(x, kernel_params):
    """x: any shape whose elements flatten to rows of 15 features
    (matches torch's x.reshape(-1, 15)). Returns (out1, out2), each (N, 1)."""
    wt, vh, bh = kernel_params
    hidden3 = wt.shape[1]

    x2d = jnp.reshape(x, (-1, IN_DIM)).astype(jnp.float32)
    n = x2d.shape[0]
    if n == 0:
        empty = jnp.zeros((0, OUT_DIM), jnp.float32)
        return empty, empty

    # Tile selection: >=2 grid steps for moderate N (v7x megacore sharding),
    # capped at MAX_TILE_N; minimal tail padding.
    n_aligned = _round_up(n, ROW_ALIGN)
    if n_aligned <= ROW_ALIGN:
        tile_n, steps = ROW_ALIGN, 1
    else:
        steps = max(2, pl.cdiv(n_aligned, MAX_TILE_N))
        tile_n = _round_up(pl.cdiv(n_aligned, steps), ROW_ALIGN)
        steps = pl.cdiv(n_aligned, tile_n)
    n_pad = steps * tile_n

    # Pad rows, append the ones column (picks up the folded trunk bias),
    # cast to bf16 so the x DMA is half-width.
    xb = jnp.pad(x2d, ((0, n_pad - n), (0, 0)))
    xb = jnp.concatenate([xb, jnp.ones((n_pad, 1), xb.dtype)],
                         axis=1).astype(jnp.bfloat16)                # (n_pad, 16)

    flops = n_pad * (2 * K_DIM * hidden3 + 2 * hidden3 * 2)
    transcendentals = n_pad * (hidden3 + 2)
    bytes_accessed = (n_pad * K_DIM * 2 + n_pad * 2 * 4
                      + (wt.size + vh.size) * 2 + bh.size * 4)

    out_t = pl.pallas_call(
        _mtl_kernel,
        grid=(steps,),
        in_specs=[
            pl.BlockSpec((tile_n, K_DIM), lambda i: (i, 0)),
            pl.BlockSpec((K_DIM, hidden3), lambda i: (0, 0)),
            pl.BlockSpec((2, hidden3), lambda i: (0, 0)),
            pl.BlockSpec((2, 1), lambda i: (0, 0)),
        ],
        out_specs=pl.BlockSpec((2, tile_n), lambda i: (0, i)),
        out_shape=jax.ShapeDtypeStruct((2, n_pad), jnp.float32),
        compiler_params=pltpu.CompilerParams(
            dimension_semantics=("parallel",),   # megacore shards rows on v7x
            vmem_limit_bytes=48 * 1024 * 1024,   # v7x-safe, load-bearing on v5e
        ),
        cost_estimate=pl.CostEstimate(
            flops=flops,
            transcendentals=transcendentals,
            bytes_accessed=bytes_accessed,
        ),
    )(xb, wt, vh, bh)

    out1 = out_t[0, :n].reshape(n, OUT_DIM)
    out2 = out_t[1, :n].reshape(n, OUT_DIM)
    return out1, out2


def init_params(hidden_unit=128, seed=42):
    """Deterministic synthetic parameters in the torch nn.Linear layout:
    weight (out, in), bias (out,)."""
    keys = jax.random.split(jax.random.PRNGKey(seed), 10)
    u = lambda k, shape, s: jax.random.uniform(k, shape, jnp.float32, -s, s)
    ws  = u(keys[0], (hidden_unit, IN_DIM), 0.25)
    bs  = u(keys[1], (hidden_unit,), 0.25)
    wp1 = u(keys[2], (hidden_unit, IN_DIM), 0.25)
    bp1 = u(keys[3], (hidden_unit,), 0.25)
    wp2 = u(keys[4], (hidden_unit, IN_DIM), 0.25)
    bp2 = u(keys[5], (hidden_unit,), 0.25)
    w1  = u(keys[6], (OUT_DIM, 2 * hidden_unit), 0.08)
    b1  = u(keys[7], (OUT_DIM,), 0.08)
    w2  = u(keys[8], (OUT_DIM, 2 * hidden_unit), 0.08)
    b2  = u(keys[9], (OUT_DIM,), 0.08)
    return ws, bs, wp1, bp1, wp2, bp2, w1, b1, w2, b2


def _reference(x, raw):
    """Pure-JAX f32 replica of SharedPrivateMTL.forward."""
    ws, bs, wp1, bp1, wp2, bp2, w1, b1, w2, b2 = raw
    x2d = jnp.reshape(x, (-1, IN_DIM)).astype(jnp.float32)
    a_s = jnp.tanh(x2d @ ws.T + bs)
    a_1 = jnp.tanh(x2d @ wp1.T + bp1)
    a_2 = jnp.tanh(x2d @ wp2.T + bp2)
    out1 = jax.nn.sigmoid(jnp.concatenate([a_s, a_1], axis=1) @ w1.T + b1)
    out2 = jax.nn.sigmoid(jnp.concatenate([a_s, a_2], axis=1) @ w2.T + b2)
    return out1, out2


if __name__ == "__main__":
    hidden_unit = 128                      # module default
    raw = init_params(hidden_unit)
    kparams = prepare_params(raw)

    # Small deterministic input: batch=2, seq=8, feat=15 -> reshape(-1, 15)
    x = jax.random.normal(jax.random.PRNGKey(0), (2, 8, IN_DIM),
                          dtype=jnp.float32)

    out1, out2 = shared_private_mtl(x, kparams)
    out1 = jax.block_until_ready(out1)
    out2 = jax.block_until_ready(out2)

    ref1, ref2 = _reference(x, raw)
    assert out1.shape == (16, OUT_DIM) and out2.shape == (16, OUT_DIM)
    # bf16 MXU operands / bf16 tanh: sigmoid outputs agree to ~1e-2.
    assert jnp.allclose(out1, ref1, atol=1e-2, rtol=1e-2), \
        float(jnp.max(jnp.abs(out1 - ref1)))
    assert jnp.allclose(out2, ref2, atol=1e-2, rtol=1e-2), \
        float(jnp.max(jnp.abs(out2 - ref2)))

    print("KERNEL_OK")
</pallas_src>

<mosaic_0001>
module attributes {stable_mosaic.version = 11 : i64} {
  func.func @_mtl_kernel(%arg0: i32, %arg1: memref<512x16xbf16, #tpu.memory_space<vmem>>, %arg2: memref<16x384xbf16, #tpu.memory_space<vmem>>, %arg3: memref<2x384xbf16, #tpu.memory_space<vmem>>, %arg4: memref<2x1xf32, #tpu.memory_space<vmem>>, %arg5: memref<2x512xf32, #tpu.memory_space<vmem>>) attributes {dimension_semantics = [#tpu.dimension_semantics<parallel>], iteration_bounds = array<i64: 1>, scalar_prefetch = 0 : i64, scratch_operands = 0 : i64, tpu.core_type = #tpu.core_type<tc>, window_params = [{transform_indices = @transform_0, window_bounds = array<i64: 512, 16>}, {pipeline_mode = #tpu.pipeline_mode<synchronous>, transform_indices = @transform_1, window_bounds = array<i64: 16, 384>}, {pipeline_mode = #tpu.pipeline_mode<synchronous>, transform_indices = @transform_2, window_bounds = array<i64: 2, 384>}, {pipeline_mode = #tpu.pipeline_mode<synchronous>, transform_indices = @transform_3, window_bounds = array<i64: 2, 1>}, {transform_indices = @transform_4, window_bounds = array<i64: 2, 512>}]} {
    %c0 = arith.constant 0 : index
    %c0_0 = arith.constant 0 : index
    %0 = vector.load %arg1[%c0, %c0_0] : memref<512x16xbf16, #tpu.memory_space<vmem>>, vector<512x16xbf16>
    %c0_1 = arith.constant 0 : index
    %c0_2 = arith.constant 0 : index
    %1 = vector.load %arg2[%c0_1, %c0_2] : memref<16x384xbf16, #tpu.memory_space<vmem>>, vector<16x384xbf16>
    %cst = arith.constant dense<0.000000e+00> : vector<512x384xf32>
    %2 = tpu.matmul %0, %1, %cst {dimension_numbers = #tpu.dot_dimension_numbers<[1], [0], [0], [1], [0, 0, 1, 1], [], []>} : vector<512x16xbf16>, vector<16x384xbf16>, vector<512x384xf32> -> vector<512x384xf32>
    %3 = arith.truncf %2 : vector<512x384xf32> to vector<512x384xbf16>
    %4 = math.tanh %3 : vector<512x384xbf16>
    %c0_3 = arith.constant 0 : index
    %c0_4 = arith.constant 0 : index
    %5 = vector.load %arg3[%c0_3, %c0_4] : memref<2x384xbf16, #tpu.memory_space<vmem>>, vector<2x384xbf16>
    %6 = tpu.transpose %4, [1, 0] : vector<512x384xbf16> -> vector<384x512xbf16>
    %cst_5 = arith.constant dense<0.000000e+00> : vector<2x512xf32>
    %7 = tpu.matmul %5, %6, %cst_5 {dimension_numbers = #tpu.dot_dimension_numbers<[1], [0], [0], [1], [0, 0, 1, 1], [], []>} : vector<2x384xbf16>, vector<384x512xbf16>, vector<2x512xf32> -> vector<2x512xf32>
    %c0_6 = arith.constant 0 : index
    %c0_7 = arith.constant 0 : index
    %8 = vector.load %arg4[%c0_6, %c0_7] : memref<2x1xf32, #tpu.memory_space<vmem>>, vector<2x1xf32>
    %9 = vector.broadcast %8 : vector<2x1xf32> to vector<2x512xf32>
    %10 = arith.addf %7, %9 : vector<2x512xf32>
    %11 = arith.negf %10 : vector<2x512xf32>
    %12 = math.exp %11 : vector<2x512xf32>
    %cst_8 = arith.constant 1.000000e+00 : f32
    %13 = vector.broadcast %cst_8 : f32 to vector<2x512xf32>
    %14 = arith.addf %13, %12 : vector<2x512xf32>
    %15 = arith.divf %13, %14 : vector<2x512xf32>
    %c0_9 = arith.constant 0 : index
    %c0_10 = arith.constant 0 : index
    %16 = vector.load %arg5[%c0_9, %c0_10] : memref<2x512xf32, #tpu.memory_space<vmem>>, vector<2x512xf32>
    tpu.vector_store %arg5[%c0_9, %c0_10], %15 {strides = array<i32>} : memref<2x512xf32, #tpu.memory_space<vmem>>, vector<2x512xf32>,
    return
  }
  func.func @transform_0(%arg0: i32) -> (i32, i32) {
    %c0_i32 = arith.constant 0 : i32
    %c0_i32_0 = arith.constant 0 : i32
    return %arg0, %c0_i32 : i32, i32
  }
  func.func @transform_1(%arg0: i32) -> (i32, i32) {
    %c0_i32 = arith.constant 0 : i32
    %c0_i32_0 = arith.constant 0 : i32
    %c0_i32_1 = arith.constant 0 : i32
    return %c0_i32, %c0_i32_0 : i32, i32
  }
  func.func @transform_2(%arg0: i32) -> (i32, i32) {
    %c0_i32 = arith.constant 0 : i32
    %c0_i32_0 = arith.constant 0 : i32
    %c0_i32_1 = arith.constant 0 : i32
    return %c0_i32, %c0_i32_0 : i32, i32
  }
  func.func @transform_3(%arg0: i32) -> (i32, i32) {
    %c0_i32 = arith.constant 0 : i32
    %c0_i32_0 = arith.constant 0 : i32
    %c0_i32_1 = arith.constant 0 : i32
    return %c0_i32, %c0_i32_0 : i32, i32
  }
  func.func @transform_4(%arg0: i32) -> (i32, i32) {
    %c0_i32 = arith.constant 0 : i32
    %c0_i32_0 = arith.constant 0 : i32
    return %c0_i32, %arg0 : i32, i32
  }
}

</mosaic_0001>

<bundles_post_ra>
// kernel: tpu_custom_call.1
= control target key start
LH: loop header
LB: loop body
LE: loop exit
PB: predicated region body
PF: predicated region fallthrough
CT: control target
= control target key end

     0   :  { %v1963_v2 = vmov 0   ;;  %vm263_vm0 = vcmask 130048   ;;  %s2811_s0 = inlined_call_operand.vmem [shape: bf16[512,16], index: 0, kind: input, shape index: {}]   ;;  %s2812_s1 = inlined_call_operand.vmem [shape: bf16[16,384], index: 1, kind: input, shape index: {}]   ;;  %s2813_s2 = inlined_call_operand.vmem [shape: bf16[2,384], index: 2, kind: input, shape index: {}]   ;;  %s2814_s3 = inlined_call_operand.vmem [shape: f32[2,1], index: 3, kind: input, shape index: {}]   ;;  %s2815_s4 = inlined_call_operand.hbm [shape: f32[2,512], index: 4, kind: output, shape index: {}]  }
   0x1   :  { %v1697_v0 = vld [vmem:[%s2812_s1 + $0x4] ss:$12 sps:$4 sm:$0xff]   ;;  %v1699_v1 = vld [vmem:[%s2812_s1] ss:$12 sps:$4 sm:$0xff]   ;;  %392 = vmatprep.mubr.bf16.mxu0 %v1963_v2  ;;  %1696 = vset.pattern.permute.xlu0 %v1963_v2  ;;  %v1717_v6 = vld [vmem:[%s2812_s1 + $0x8] ss:$12 sps:$4 sm:$0xff]  }
   0x2   :  { %374 = vmatprep.subr.bf16.mxu0 %v1697_v0  ;;  %v1700_v3 = vld [vmem:[%s2811_s0] sm:$0xff]   ;;  %v1701_v4 = vld [vmem:[%s2811_s0 + $0x8] sm:$0xff]   ;;  %v1702_v5 = vld [vmem:[%s2811_s0 + $0x10] sm:$0xff]   ;;  %1626 = vmatprep.subr.bf16.mxu1 %v1717_v6 }
   0x3   :  { %375 = vmatpush1.bf16.msra.mxu0 %v1699_v1  ;;  %1628 = vmatprep.mubr.msk.bf16.mxu1 %vm263_vm0, %v1700_v3  ;;  %v1703_v7 = vld [vmem:[%s2811_s0 + $0x18] sm:$0xff]  }
   0x4   :  { %1627 = vmatpush3.bf16.msra.mxu1 %v1717_v6 }
   0x6   :  { %1488 = vmatmul.mubr.msk.bf16.vlgmr.msra.gmra.mxu0 %vm263_vm0, %v1700_v3 }
   0x7   :  { %402 = vmatprep.mubr.bf16.mxu0 %v1963_v2  ;;  %1629 = vmatmul.mubr.msk.bf16.vlgmr.msra.gmra.mxu1 %vm263_vm0, %v1701_v4 }
   0x8   :  { %1632 = vmatprep.mubr.msk.bf16.mxu1 %vm263_vm0, %v1702_v5 }
   0xe   :  { %1489 = vmatmul.mubr.msk.bf16.gmra.mxu0 %vm263_vm0, %v1701_v4 }
   0xf   :  { %412 = vmatprep.mubr.bf16.mxu0 %v1963_v2 }
  0x16   :  { %1490 = vmatmul.mubr.msk.bf16.gmra.mxu0 %vm263_vm0, %v1702_v5 }
  0x17   :  { %422 = vmatprep.mubr.bf16.mxu0 %v1963_v2 }
  0x1e   :  { %1491 = vmatmul.mubr.msk.bf16.gmra.mxu0 %vm263_vm0, %v1703_v7 }
  0x1f   :  { %9 = vsyncpa [#allocation3], 0  ;;  %432 = vmatprep.mubr.bf16.mxu0 %v1963_v2  ;;  %v1704_v8 = vld [vmem:[%s2811_s0 + $0x20] sm:$0xff]   ;;  %1633 = vmatmul.mubr.msk.bf16.gmra.mxu1 %vm263_vm0, %v1703_v7  ;;  %v1705_v9 = vld [vmem:[%s2811_s0 + $0x28] sm:$0xff]   ;;  %v1213_v0 = vlaneseq }
  0x20   :  { %1636 = vmatprep.mubr.msk.bf16.mxu1 %vm263_vm0, %v1704_v8  ;;  %v1706_v10 = vld [vmem:[%s2811_s0 + $0x30] sm:$0xff]   ;;  %v1707_v11 = vld [vmem:[%s2811_s0 + $0x38] sm:$0xff]   ;;  %v1708_v12 = vld [vmem:[%s2811_s0 + $0x40] sm:$0xff]  }
  0x21   :  { %v1709_v13 = vld [vmem:[%s2811_s0 + $0x48] sm:$0xff]   ;;  %v1710_v14 = vld [vmem:[%s2811_s0 + $0x50] sm:$0xff]   ;;  %v1711_v15 = vld [vmem:[%s2811_s0 + $0x58] sm:$0xff]  }
  0x22   :  { %v1712_v16 = vld [vmem:[%s2811_s0 + $0x60] sm:$0xff]   ;;  %v1713_v17 = vld [vmem:[%s2811_s0 + $0x68] sm:$0xff]   ;;  %v1714_v18 = vld [vmem:[%s2811_s0 + $0x70] sm:$0xff]  }
  0x23   :  { %v1715_v19 = vld [vmem:[%s2811_s0 + $0x78] sm:$0xff]   ;;  %v1716_v20 = vld [vmem:[%s2811_s0 + $0x80] sm:$0xff]   ;;  %v1718_v21 = vld [vmem:[%s2811_s0 + $0x88] sm:$0xff]  }
  0x24   :  { %v1719_v22 = vld [vmem:[%s2811_s0 + $0x90] sm:$0xff]   ;;  %v1720_v23 = vld [vmem:[%s2811_s0 + $0x98] sm:$0xff]   ;;  %v1721_v24 = vld [vmem:[%s2811_s0 + $0xa0] sm:$0xff]  }
  0x25   :  { %v1722_v25 = vld [vmem:[%s2811_s0 + $0xa8] sm:$0xff]   ;;  %v1723_v26 = vld [vmem:[%s2811_s0 + $0xb0] sm:$0xff]   ;;  %v1724_v27 = vld [vmem:[%s2811_s0 + $0xb8] sm:$0xff]  }
  0x26   :  { %1492 = vmatmul.mubr.msk.bf16.gmra.mxu0 %vm263_vm0, %v1704_v8  ;;  %v1725_v28 = vld [vmem:[%s2811_s0 + $0xc0] sm:$0xff]   ;;  %v1726_v29 = vld [vmem:[%s2811_s0 + $0xc8] sm:$0xff]   ;;  %v1727_v30 = vld [vmem:[%s2811_s0 + $0xd0] sm:$0xff]  }
  0x27   :  { %442 = vmatprep.mubr.bf16.mxu0 %v1963_v2  ;;  %1637 = vmatmul.mubr.msk.bf16.gmra.mxu1 %vm263_vm0, %v1705_v9  ;;  %v1728_v31 = vld [vmem:[%s2811_s0 + $0xd8] sm:$0xff]   ;;  %v2149_v32 = vld [vmem:[%s2811_s0 + $0xe0] sm:$0xff]   ;;  %v2159_v33 = vld [vmem:[%s2811_s0 + $0xe8] sm:$0xff]  }
  0x28   :  { %1640 = vmatprep.mubr.msk.bf16.mxu1 %vm263_vm0, %v1706_v10  ;;  %v2164_v34 = vld [vmem:[%s2811_s0 + $0xf0] sm:$0xff]   ;;  %v2173_v35 = vld [vmem:[%s2811_s0 + $0xf8] sm:$0xff]  }
  0x2e   :  { %1493 = vmatmul.mubr.msk.bf16.gmra.mxu0 %vm263_vm0, %v1705_v9 }
  0x2f   :  { %452 = vmatprep.mubr.bf16.mxu0 %v1963_v2  ;;  %1641 = vmatmul.mubr.msk.bf16.gmra.mxu1 %vm263_vm0, %v1707_v11 }
  0x30   :  { %1644 = vmatprep.mubr.msk.bf16.mxu1 %vm263_vm0, %v1708_v12 }
  0x36   :  { %1494 = vmatmul.mubr.msk.bf16.gmra.mxu0 %vm263_vm0, %v1706_v10 }
  0x37   :  { %462 = vmatprep.mubr.bf16.mxu0 %v1963_v2  ;;  %1645 = vmatmul.mubr.msk.bf16.gmra.mxu1 %vm263_vm0, %v1709_v13 }
  0x38   :  { %1648 = vmatprep.mubr.msk.bf16.mxu1 %vm263_vm0, %v1710_v14 }
  0x3e   :  { %1495 = vmatmul.mubr.msk.bf16.gmra.mxu0 %vm263_vm0, %v1707_v11 }
  0x3f   :  { %472 = vmatprep.mubr.bf16.mxu0 %v1963_v2  ;;  %1649 = vmatmul.mubr.msk.bf16.gmra.mxu1 %vm263_vm0, %v1711_v15 }
  0x40   :  { %1652 = vmatprep.mubr.msk.bf16.mxu1 %vm263_vm0, %v1712_v16 }
  0x46   :  { %1496 = vmatmul.mubr.msk.bf16.gmra.mxu0 %vm263_vm0, %v1708_v12 }
  0x47   :  { %482 = vmatprep.mubr.bf16.mxu0 %v1963_v2  ;;  %1653 = vmatmul.mubr.msk.bf16.gmra.mxu1 %vm263_vm0, %v1713_v17 }
  0x48   :  { %1656 = vmatprep.mubr.msk.bf16.mxu1 %vm263_vm0, %v1714_v18 }
  0x4e   :  { %1497 = vmatmul.mubr.msk.bf16.gmra.mxu0 %vm263_vm0, %v1709_v13 }
  0x4f   :  { %492 = vmatprep.mubr.bf16.mxu0 %v1963_v2  ;;  %1657 = vmatmul.mubr.msk.bf16.gmra.mxu1 %vm263_vm0, %v1715_v19 }
  0x50   :  { %1660 = vmatprep.mubr.msk.bf16.mxu1 %vm263_vm0, %v1716_v20 }
  0x56   :  { %1498 = vmatmul.mubr.msk.bf16.gmra.mxu0 %vm263_vm0, %v1710_v14 }
  0x57   :  { %502 = vmatprep.mubr.bf16.mxu0 %v1963_v2  ;;  %1661 = vmatmul.mubr.msk.bf16.gmra.mxu1 %vm263_vm0, %v1718_v21 }
  0x58   :  { %1664 = vmatprep.mubr.msk.bf16.mxu1 %vm263_vm0, %v1719_v22 }
  0x5e   :  { %1499 = vmatmul.mubr.msk.bf16.gmra.mxu0 %vm263_vm0, %v1711_v15 }
  0x5f   :  { %512 = vmatprep.mubr.bf16.mxu0 %v1963_v2  ;;  %1665 = vmatmul.mubr.msk.bf16.gmra.mxu1 %vm263_vm0, %v1720_v23 }
  0x60   :  { %1668 = vmatprep.mubr.msk.bf16.mxu1 %vm263_vm0, %v1721_v24 }
  0x66   :  { %1500 = vmatmul.mubr.msk.bf16.gmra.mxu0 %vm263_vm0, %v1712_v16 }
  0x67   :  { %522 = vmatprep.mubr.bf16.mxu0 %v1963_v2  ;;  %1669 = vmatmul.mubr.msk.bf16.gmra.mxu1 %vm263_vm0, %v1722_v25 }
  0x68   :  { %1672 = vmatprep.mubr.msk.bf16.mxu1 %vm263_vm0, %v1723_v26 }
  0x6e   :  { %1501 = vmatmul.mubr.msk.bf16.gmra.mxu0 %vm263_vm0, %v1713_v17 }
  0x6f   :  { %532 = vmatprep.mubr.bf16.mxu0 %v1963_v2  ;;  %1673 = vmatmul.mubr.msk.bf16.gmra.mxu1 %vm263_vm0, %v1724_v27 }
  0x70   :  { %1676 = vmatprep.mubr.msk.bf16.mxu1 %vm263_vm0, %v1725_v28 }
  0x76   :  { %1502 = vmatmul.mubr.msk.bf16.gmra.mxu0 %vm263_vm0, %v1714_v18 }
  0x77   :  { %542 = vmatprep.mubr.bf16.mxu0 %v1963_v2  ;;  %1677 = vmatmul.mubr.msk.bf16.gmra.mxu1 %vm263_vm0, %v1726_v29 }
  0x78   :  { %1680 = vmatprep.mubr.msk.bf16.mxu1 %vm263_vm0, %v1727_v30 }
  0x7e   :  { %1503 = vmatmul.mubr.msk.bf16.gmra.mxu0 %vm263_vm0, %v1715_v19 }
  0x7f   :  { %552 = vmatprep.mubr.bf16.mxu0 %v1963_v2  ;;  %1681 = vmatmul.mubr.msk.bf16.gmra.mxu1 %vm263_vm0, %v1728_v31 }
  0x80   :  { %1684 = vmatprep.mubr.msk.bf16.mxu1 %vm263_vm0, %v2149_v32 }
  0x86   :  { %1504 = vmatmul.mubr.msk.bf16.gmra.mxu0 %vm263_vm0, %v1716_v20 }
  0x87   :  { %562 = vmatprep.mubr.bf16.mxu0 %v1963_v2  ;;  %1685 = vmatmul.mubr.msk.bf16.gmra.mxu1 %vm263_vm0, %v2159_v33 }
  0x88   :  { %1688 = vmatprep.mubr.msk.bf16.mxu1 %vm263_vm0, %v2164_v34 }
  0x8e   :  { %1505 = vmatmul.mubr.msk.bf16.gmra.mxu0 %vm263_vm0, %v1718_v21 }
  0x8f   :  { %572 = vmatprep.mubr.bf16.mxu0 %v1963_v2  ;;  %1689 = vmatmul.mubr.msk.bf16.gmra.mxu1 %vm263_vm0, %v2173_v35 }
  0x96   :  { %1506 = vmatmul.mubr.msk.bf16.gmra.mxu0 %vm263_vm0, %v1719_v22 }
  0x97   :  { %582 = vmatprep.mubr.bf16.mxu0 %v1963_v2 }
  0x9e   :  { %1507 = vmatmul.mubr.msk.bf16.gmra.mxu0 %vm263_vm0, %v1720_v23 }
  0x9f   :  { %592 = vmatprep.mubr.bf16.mxu0 %v1963_v2 }
  0xa6   :  { %1508 = vmatmul.mubr.msk.bf16.gmra.mxu0 %vm263_vm0, %v1721_v24 }
  0xa7   :  { %602 = vmatprep.mubr.bf16.mxu0 %v1963_v2 }
  0xae   :  { %1509 = vmatmul.mubr.msk.bf16.gmra.mxu0 %vm263_vm0, %v1722_v25 }
  0xaf   :  { %612 = vmatprep.mubr.bf16.mxu0 %v1963_v2 }
  0xb6   :  { %1510 = vmatmul.mubr.msk.bf16.gmra.mxu0 %vm263_vm0, %v1723_v26 }
  0xb7   :  { %622 = vmatprep.mubr.bf16.mxu0 %v1963_v2 }
  0xbe   :  { %1511 = vmatmul.mubr.msk.bf16.gmra.mxu0 %vm263_vm0, %v1724_v27 }
  0xbf   :  { %632 = vmatprep.mubr.bf16.mxu0 %v1963_v2 }
  0xc6   :  { %v2191_v36 = vpop.f32.mrf.mxu0  ;;  %1512 = vmatmul.mubr.msk.bf16.gmra.mxu0 %vm263_vm0, %v1725_v28 }
  0xc7   :  { %642 = vmatprep.mubr.bf16.mxu0 %v1963_v2  ;;  %v2225_v50 = vpop.f32.mrf.mxu1 }
  0xc8   :  { %v2195_v37 = vpop.f32.mrf.mxu0  ;;  %2842 = vst [vmem:[#allocation5_spill] sm:$0xff] %v2225_v50 }
  0xc9   :  { %v2231_v53 = vpop.f32.mrf.mxu1 }
  0xca   :  { %v2197_v38 = vpop.f32.mrf.mxu0  ;;  %2843 = vst [vmem:[#allocation6_spill] sm:$0xff] %v2231_v53 }
  0xcb   :  { %v2237_v56 = vpop.f32.mrf.mxu1 }
  0xcc   :  { %v2201_v40 = vpop.f32.mrf.mxu0  ;;  %2844 = vst [vmem:[#allocation7_spill] sm:$0xff] %v2237_v56 }
  0xcd   :  { %v2245_v59 = vpop.f32.mrf.mxu1 }
  0xce   :  { %v2205_v42 = vpop.f32.mrf.mxu0  ;;  %1513 = vmatmul.mubr.msk.bf16.gmra.mxu0 %vm263_vm0, %v1726_v29  ;;  %2845 = vst [vmem:[#allocation8_spill] sm:$0xff] %v2245_v59 }
  0xcf   :  { %652 = vmatprep.mubr.bf16.mxu0 %v1963_v2 }
  0xd0   :  { %v2209_v43 = vpop.f32.mrf.mxu0 }
  0xd2   :  { %v2211_v44 = vpop.f32.mrf.mxu0 }
  0xd4   :  { %v2215_v46 = vpop.f32.mrf.mxu0 }
  0xd6   :  { %v2219_v48 = vpop.f32.mrf.mxu0  ;;  %1514 = vmatmul.mubr.msk.bf16.gmra.mxu0 %vm263_vm0, %v1727_v30 }
  0xd7   :  { %662 = vmatprep.mubr.bf16.mxu0 %v1963_v2 }
  0xd8   :  { %v2223_v49 = vpop.f32.mrf.mxu0 }
  0xda   :  { %v2227_v51 = vpop.f32.mrf.mxu0 }
  0xdc   :  { %v2233_v54 = vpop.f32.mrf.mxu0 }
  0xde   :  { %v2239_v57 = vpop.f32.mrf.mxu0  ;;  %1515 = vmatmul.mubr.msk.bf16.gmra.mxu0 %vm263_vm0, %v1728_v31 }
  0xdf   :  { %672 = vmatprep.mubr.bf16.mxu0 %v1963_v2  ;;  %v2251_v62 = vpop.f32.mrf.mxu1 }
  0xe0   :  { %v2247_v60 = vpop.f32.mrf.mxu0  ;;  %2846 = vst [vmem:[#allocation9_spill] sm:$0xff] %v2251_v62  ;;  %v2868_v62 = vpack.c.bf16 %v2233_v54, %v2223_v49  ;;  %v2873_v49 = vpack.c.bf16 %v2227_v51, %v2219_v48 }
  0xe1   :  { %v2257_v1 = vpop.f32.mrf.mxu1 }
  0xe2   :  { %v2253_v63 = vpop.f32.mrf.mxu0  ;;  %2847 = vst [vmem:[#allocation10_spill] sm:$0xff] %v2257_v1 }
  0xe3   :  { %v2261_v4 = vpop.f32.mrf.mxu1 }
  0xe4   :  { %v2259_v3 = vpop.f32.mrf.mxu0  ;;  %2848 = vst [vmem:[#allocation11_spill] sm:$0xff] %v2261_v4 }
  0xe5   :  { %v2270_v7 = vpop.f32.mrf.mxu1 }
  0xe6   :  { %v2263_v5 = vpop.f32.mrf.mxu0  ;;  %1516 = vmatmul.mubr.msk.bf16.gmra.mxu0 %vm263_vm0, %v2149_v32  ;;  %2849 = vst [vmem:[#allocation12_spill] sm:$0xff] %v2270_v7 }
  0xe7   :  { %682 = vmatprep.mubr.bf16.mxu0 %v1963_v2  ;;  %v2276_v10 = vpop.f32.mrf.mxu1 }
  0xe8   :  { %v2272_v8 = vpop.f32.mrf.mxu0 }
  0xe9   :  { %v2280_v12 = vpop.f32.mrf.mxu1 }
  0xea   :  { %v2278_v11 = vpop.f32.mrf.mxu0  ;;  %2850 = vst [vmem:[#allocation13_spill] sm:$0xff] %v2280_v12 }
  0xeb   :  { %v2284_v14 = vpop.f32.mrf.mxu1 }
  0xec   :  { %v2282_v13 = vpop.f32.mrf.mxu0 }
  0xed   :  { %v2291_v16 = vpop.f32.mrf.mxu1 }
  0xee   :  { %v2286_v15 = vpop.f32.mrf.mxu0  ;;  %1517 = vmatmul.mubr.msk.bf16.gmra.mxu0 %vm263_vm0, %v2159_v33  ;;  %2851 = vst [vmem:[#allocation14_spill] sm:$0xff] %v2291_v16 }
  0xef   :  { %692 = vmatprep.mubr.bf16.mxu0 %v1963_v2  ;;  %v2295_v19 = vpop.f32.mrf.mxu1 }
  0xf0   :  { %v446_v17 = vpop.f32.mrf.mxu0 }
  0xf1   :  { %v2299_v21 = vpop.f32.mrf.mxu1 }
  0xf2   :  { %v2297_v20 = vpop.f32.mrf.mxu0 }
  0xf3   :  { %v2301_v23 = vpop.f32.mrf.mxu1 }
  0xf4   :  { %v450_v22 = vpop.f32.mrf.mxu0 }
  0xf5   :  { %v2306_v25 = vpop.f32.mrf.mxu1 }
  0xf6   :  { %v454_v24 = vpop.f32.mrf.mxu0  ;;  %1518 = vmatmul.mubr.msk.bf16.gmra.mxu0 %vm263_vm0, %v2164_v34 }
  0xf7   :  { %702 = vmatprep.mubr.bf16.mxu0 %v1963_v2  ;;  %v2308_v27 = vpop.f32.mrf.mxu1 }
  0xf8   :  { %v456_v26 = vpop.f32.mrf.mxu0  ;;  %2852 = vst [vmem:[#allocation15_spill] sm:$0xff] %v2308_v27  ;;  %v1015_v27 = vpack.c.bf16 %v2282_v13, %v2272_v8 }
  0xf9   :  { %v2310_v29 = vpop.f32.mrf.mxu1 }
  0xfa   :  { %v458_v28 = vpop.f32.mrf.mxu0  ;;  %2853 = vst [vmem:[#allocation16_spill] sm:$0xff] %v2310_v29 }
  0xfb   :  { %v2312_v31 = vpop.f32.mrf.mxu1 }
  0xfc   :  { %v460_v30 = vpop.f32.mrf.mxu0  ;;  %2854 = vst [vmem:[#allocation17_spill] sm:$0xff] %v2312_v31 }
  0xfd   :  { %v2318_v34 = vpop.f32.mrf.mxu1  ;;  %v1021_v41 = vpack.c.bf16 %v460_v30, %v456_v26 }
  0xfe   :  { %v464_v32 = vpop.f32.mrf.mxu0  ;;  %1519 = vmatmul.mubr.msk.bf16.gmra.mxu0 %vm263_vm0, %v2173_v35  ;;  %2855 = vst [vmem:[#allocation18_spill] sm:$0xff] %v2318_v34  ;;  %v1017_v34 = vpack.c.bf16 %v2297_v20, %v2286_v15 }
  0xff   :  { %v2322_v58 = vpop.f32.mrf.mxu1 }
 0x100   :  { %v466_v2 = vpop.f32.mrf.mxu0 }
 0x101   :  { %v2324_v6 = vpop.f32.mrf.mxu1 }
 0x102   :  { %v468_v9 = vpop.f32.mrf.mxu0  ;;  %2856 = vst [vmem:[#allocation19_spill] sm:$0xff] %v2324_v6 }
 0x103   :  { %v1023_v18 = vpack.c.bf16 %v468_v9, %v464_v32  ;;  %v2326_v47 = vpop.f32.mrf.mxu1  ;;  %v1018_v32 = vpack.c.bf16 %v450_v22, %v446_v17  ;;  %v2352_v9 = vshrl.u32 %v1213_v0, 7  ;;  %v1552_v17 = vld.sshfl [vmem:[%s2813_s2] sm:$0x13 pattern:$0x75316420] }
 0x104   :  { %v470_v39 = vpop.f32.mrf.mxu0 }
 0x105   :  { %v1024_v45 = vpack.c.bf16 %v470_v39, %v466_v2  ;;  %v2330_v33 = vpop.f32.mrf.mxu1  ;;  %v1020_v39 = vpack.c.bf16 %v458_v28, %v454_v24  ;;  %v1964_v2 = vmov 1966171168   ;;  %2858 = vst [vmem:[#allocation21_spill] sm:$0xff] %v2352_v9  ;;  %v1209_v28 = vcombine.high %v1552_v17, %v1552_v17 }
 0x106   :  { %v2328_v35 = vpop.f32.mrf.mxu0  ;;  %2857 = vst [vmem:[#allocation20_spill] sm:$0xff] %v2330_v33 }
 0x107   :  { %1733 = vtanh.bf16 %v1024_v45  ;;  %v2334_v61 = vpop.f32.mrf.mxu1 }
 0x108   :  { %1735 = vtanh.bf16 %v1023_v18  ;;  %v2332_v52 = vpop.f32.mrf.mxu0 }
 0x109   :  { %1737 = vtanh.bf16 %v1021_v41  ;;  %v2340_v26 = vpop.f32.mrf.mxu1  ;;  %v1211_v41 = vunpack.c.l.s4 %v1964_v2 }
 0x10a   :  { %v2336_v55 = vpop.f32.mrf.mxu0  ;;  %1739 = vtanh.bf16 %v1020_v39 }
 0x10b   :  { %v2346_v18 = vpop.f32.mrf.mxu1  ;;  %v1212_v29 = vunpack.c.0.s8 %v1211_v41  ;;  %1741 = vtanh.bf16 %v1018_v32 }
 0x10c   :  { %v2342_v30 = vpop.f32.mrf.mxu0  ;;  %1743 = vtanh.bf16 %v1017_v34  ;;  %v1012_v34 = vpack.c.bf16 %v2259_v3, %v2247_v60 }
 0x10d   :  { %v2350_v59 = vpop.f32.mrf.mxu1  ;;  %v1215_v2 = vsub.s32 %v1212_v29, %v2352_v9  ;;  %1745 = vtanh.bf16 %v1015_v27 }
 0x10e   :  { %v2348_v53 = vpop.f32.mrf.mxu0 }
 0x10f   :  { %v2359_v22 = vpop.f32.mrf.mxu1  ;;  %v1223_v39 = vrot.slane %v1209_v28, %v1215_v2  ;;  %v2372_v56 = vrot.slane %v1552_v17, %v1215_v2 }
 0x110   :  { %v2354_v24 = vpop.f32.mrf.mxu0 }
 0x111   :  { %v2366_v0 = vpop.f32.mrf.mxu1  ;;  %1260 = vmatprep.mubr.bf16.mxu1 %v1223_v39  ;;  %1342 = vmatprep.mubr.bf16.mxu0 %v1223_v39 }
 0x112   :  { %v2362_v45 = vpop.f32.mrf.mxu0 }
 0x113   :  { %v2378_v9 = vpop.f32.mrf.mxu1 }
 0x114   :  { %v2370_v50 = vpop.f32.mrf.mxu0 }
 0x115   :  { %v1734_v32 = vpop.eup %1733  ;;  %v2382_v20 = vpop.f32.mrf.mxu1 }
 0x116   :  { %v1736_v41 = vpop.eup %1735  ;;  %v2380_v28 = vpop.f32.mrf.mxu0  ;;  %1228 = vmatprep.subr.bf16.mxu1 %v1734_v32  ;;  %v1014_v32 = vpack.c.bf16 %v2278_v11, %v2263_v5 }
 0x117   :  { %v1738_v15 = vpop.eup %1737  ;;  %1229 = vmatpush1.bf16.xpose.msra.mxu1 %v1736_v41  ;;  %v2386_v8 = vpop.f32.mrf.mxu1 }
 0x118   :  { %v2384_v17 = vpop.f32.mrf.mxu0  ;;  %1230 = vmatprep.subr.bf16.mxu1 %v1738_v15  ;;  %2859 = vst [vmem:[#allocation22_spill] sm:$0xff] %v2386_v8  ;;  %v1740_v29 = vpop.eup %1739  ;;  %1747 = vtanh.bf16 %v1014_v32 }
 0x119   :  { %v2392_v39 = vpop.f32.mrf.mxu1  ;;  %v1742_v1 = vpop.eup %1741  ;;  %1749 = vtanh.bf16 %v1012_v34 }
 0x11a   :  { %v2388_v13 = vpop.f32.mrf.mxu0  ;;  %2860 = vst [vmem:[#allocation23_spill] sm:$0xff] %v2392_v39  ;;  %v1744_v32 = vpop.eup %1743  ;;  %v2867_v39 = vpack.c.bf16 %v2253_v63, %v2239_v57 }
 0x11b   :  { %v2402_v15 = vpop.f32.mrf.mxu1  ;;  %v1746_v34 = vpop.eup %1745 }
 0x11c   :  { %v2396_v41 = vpop.f32.mrf.mxu0  ;;  %2861 = vst [vmem:[#allocation24_spill] sm:$0xff] %v2402_v15  ;;  %1751 = vtanh.bf16 %v2867_v39 }
 0x11d   :  { %v2408_v7 = vpop.f32.mrf.mxu1  ;;  %1753 = vtanh.bf16 %v2868_v62  ;;  %v2879_v62 = vpack.c.bf16 %v2211_v44, %v2205_v42 }
 0x11e   :  { %v2404_v31 = vpop.f32.mrf.mxu0  ;;  %2862 = vst [vmem:[#allocation25_spill] sm:$0xff] %v2408_v7  ;;  %1755 = vtanh.bf16 %v2873_v49 }
 0x11f   :  { %1231 = vmatpush1.bf16.xpose.msra.mxu1 %v1740_v29  ;;  %v2414_v3 = vpop.f32.mrf.mxu1 }
 0x120   :  { %v2410_v5 = vpop.f32.mrf.mxu0  ;;  %1232 = vmatprep.subr.bf16.mxu1 %v1742_v1  ;;  %2863 = vst [vmem:[#allocation26_spill] sm:$0xff] %v2414_v3 }
 0x121   :  { %v2420_v2 = vpop.f32.mrf.mxu1 }
 0x122   :  { %v2416_v11 = vpop.f32.mrf.mxu0  ;;  %2864 = vst [vmem:[#allocation27_spill] sm:$0xff] %v2420_v2  ;;  %v2874_v2 = vpack.c.bf16 %v2215_v46, %v2209_v43  ;;  %v2880_v46 = vpack.c.bf16 %v2201_v40, %v2195_v37  ;;  %v2882_v37 = vpack.c.bf16 %v2197_v38, %v2191_v36 }
 0x123   :  { %v2424_v8 = vpop.f32.mrf.mxu1 }
 0x124   :  { %v2422_v29 = vpop.f32.mrf.mxu0  ;;  %2865 = vst [vmem:[#allocation28_spill] sm:$0xff] %v2424_v8  ;;  %1757 = vtanh.bf16 %v2874_v2 }
 0x125   :  { %v2430_v60 = vpop.f32.mrf.mxu1  ;;  %1759 = vtanh.bf16 %v2879_v62 }
 0x126   :  { %v2426_v15 = vpop.f32.mrf.mxu0  ;;  %2866 = vst [vmem:[#allocation29_spill] sm:$0xff] %v2430_v60  ;;  %v1748_v63 = vpop.eup %1747  ;;  %1761 = vtanh.bf16 %v2880_v46 }
 0x127   :  { %1233 = vmatpush1.bf16.xpose.msra.mxu1 %v1744_v32  ;;  %v2442_v4 = vpop.f32.mrf.mxu1  ;;  %1763 = vtanh.bf16 %v2882_v37 }
 0x128   :  { %v2435_v27 = vpop.f32.mrf.mxu0  ;;  %1234 = vmatprep.subr.bf16.mxu1 %v1746_v34  ;;  %2869 = vst [vmem:[#allocation30_spill] sm:$0xff] %v2442_v4  ;;  %v1750_v34 = vpop.eup %1749 }
 0x129   :  { %v2446_v32 = vpop.f32.mrf.mxu1 }
 0x12a   :  { %v2444_v1 = vpop.f32.mrf.mxu0  ;;  %2870 = vst [vmem:[#allocation31_spill] sm:$0xff] %v2446_v32  ;;  %v1752_v48 = vpop.eup %1751 }
 0x12b   :  { %v2450_v57 = vpop.f32.mrf.mxu1  ;;  %v1754_v49 = vpop.eup %1753 }
 0x12c   :  { %v2448_v3 = vpop.f32.mrf.mxu0  ;;  %2871 = vst [vmem:[#allocation32_spill] sm:$0xff] %v2450_v57 }
 0x12d   :  { %v2454_v7 = vpop.f32.mrf.mxu1 }
 0x12e   :  { %v2452_v39 = vpop.f32.mrf.mxu0  ;;  %2872 = vst [vmem:[#allocation33_spill] sm:$0xff] %v2454_v7 }
 0x12f   :  { %1235 = vmatpush1.bf16.xpose.msra.mxu1 %v1748_v63  ;;  %v2464_v60 = vpop.f32.mrf.mxu1 }
 0x130   :  { %v526_v54 = vpop.f32.mrf.mxu0  ;;  %1236 = vmatprep.subr.bf16.mxu1 %v1750_v34  ;;  %2875 = vst [vmem:[#allocation34_spill] sm:$0xff] %v2464_v60 }
 0x131   :  { %v2468_v63 = vpop.f32.mrf.mxu1 }
 0x132   :  { %v2466_v8 = vpop.f32.mrf.mxu0  ;;  %2876 = vst [vmem:[#allocation35_spill] sm:$0xff] %v2468_v63 }
 0x133   :  { %v2470_v4 = vpop.f32.mrf.mxu1 }
 0x134   :  { %v530_v57 = vpop.f32.mrf.mxu0  ;;  %2877 = vst [vmem:[#allocation36_spill] sm:$0xff] %v2470_v4 }
 0x135   :  { %v2472_v34 = vpop.f32.mrf.mxu1 }
 0x136   :  { %v534_v51 = vpop.f32.mrf.mxu0  ;;  %2878 = vst [vmem:[#allocation37_spill] sm:$0xff] %v2472_v34 }
 0x137   :  { %1237 = vmatpush1.bf16.xpose.msra.mxu1 %v1752_v48  ;;  %v2480_v2 = vpop.f32.mrf.mxu1  ;;  %v1756_v48 = vpop.eup %1755 }
 0x138   :  { %v536_v43 = vpop.f32.mrf.mxu0  ;;  %1238 = vmatprep.subr.bf16.mxu1 %v1754_v49  ;;  %2881 = vst [vmem:[#allocation38_spill] sm:$0xff] %v2480_v2  ;;  %v1758_v44 = vpop.eup %1757 }
 0x139   :  { %v2482_v7 = vpop.f32.mrf.mxu1  ;;  %v1760_v16 = vpop.eup %1759 }
 0x13a   :  { %v538_v32 = vpop.f32.mrf.mxu0 }
 0x13b   :  { %v2484_v4 = vpop.f32.mrf.mxu1 }
 0x13c   :  { %v540_v63 = vpop.f32.mrf.mxu0 }
 0x13d   :  { %v2488_v62 = vpop.f32.mrf.mxu1  ;;  %v1045_v6 = vpack.c.bf16 %v540_v63, %v536_v43 }
 0x13e   :  { %v544_v34 = vpop.f32.mrf.mxu0 }
 0x13f   :  { %1239 = vmatpush1.bf16.xpose.msra.mxu1 %v1756_v48  ;;  %v1762_v48 = vpop.eup %1761 }
 0x140   :  { %v546_v40 = vpop.f32.mrf.mxu0  ;;  %1240 = vmatprep.subr.bf16.mxu1 %v1758_v44  ;;  %v1764_v43 = vpop.eup %1763 }
 0x142   :  { %v548_v46 = vpop.f32.mrf.mxu0 }
 0x143   :  { %v1047_v60 = vpack.c.bf16 %v548_v46, %v544_v34  ;;  %v1044_v34 = vpack.c.bf16 %v538_v32, %v534_v51  ;;  %v1041_v32 = vpack.c.bf16 %v2466_v8, %v2452_v39  ;;  %v1039_v51 = vpack.c.bf16 %v2448_v3, %v2435_v27 }
 0x144   :  { %v550_v33 = vpop.f32.mrf.mxu0  ;;  %v1038_v27 = vpack.c.bf16 %v2444_v1, %v2426_v15 }
 0x145   :  { %v1048_v12 = vpack.c.bf16 %v550_v33, %v546_v40  ;;  %v1042_v33 = vpack.c.bf16 %v530_v57, %v526_v54 }
 0x146   :  { %v2495_v42 = vpop.f32.mrf.mxu0 }
 0x147   :  { %1765 = vtanh.bf16 %v1048_v12  ;;  %1241 = vmatpush1.bf16.xpose.msra.mxu1 %v1760_v16 }
 0x148   :  { %1767 = vtanh.bf16 %v1047_v60  ;;  %v2497_v2 = vpop.f32.mrf.mxu0  ;;  %1242 = vmatprep.subr.bf16.mxu1 %v1762_v48 }
 0x149   :  { %1769 = vtanh.bf16 %v1045_v6 }
 0x14a   :  { %v2499_v36 = vpop.f32.mrf.mxu0  ;;  %1771 = vtanh.bf16 %v1044_v34 }
 0x14b   :  { %1773 = vtanh.bf16 %v1042_v33  ;;  %v1036_v33 = vpack.c.bf16 %v2422_v29, %v2410_v5 }
 0x14c   :  { %v2503_v44 = vpop.f32.mrf.mxu0  ;;  %1775 = vtanh.bf16 %v1041_v32  ;;  %v1195_v32 = vld [vmem:[%s2814_s3] sm:$0x3]  ;;  %s1966_s3 = smov [#allocation2]  }
 0x14d   :  { %1777 = vtanh.bf16 %v1039_v51  ;;  %1198 = vperm.xlu0 %1696, %v1195_v32   ;;  %v2883_v32 = vpack.c.bf16 %v2416_v11, %v2404_v31  ;;  %v2885_v31 = vpack.c.bf16 %v2388_v13, %v2380_v28  ;;  %v2888_v28 = vpack.c.bf16 %v2342_v30, %v2332_v52  ;;  %s1445_s6 = sshll.u32 %s1966_s3, 4  ;;  %s1446_s6 = int_to_ptr.vmem [resolvable:$true] %s1445_s6 }
 0x14e   :  { %v2507_v12 = vpop.f32.mrf.mxu0  ;;  %1779 = vtanh.bf16 %v1038_v27  ;;  %v1025_v52 = vpack.c.bf16 %v2301_v23, %v2295_v19  ;;  %v1022_v19 = vpack.c.bf16 %v2306_v25, %v2299_v21  ;;  %s1941_s7 = scalar_lea.vmem %s1446_s6, 128  ;;  %p1946_p1 = scmp.lt.s32.totalorder %s1446_s6, %s1446_s6 }
 0x14f   :  { %1243 = vmatpush1.bf16.xpose.msra.mxu1 %v1764_v43  ;;  %1781 = vtanh.bf16 %v1036_v33  ;;  %v2884_v33 = vpack.c.bf16 %v2396_v41, %v2384_v17  ;;  %p1942_p0 = scmp.ne.s32.totalorder %s1446_s6, %s1941_s7  ;;  %p1947_p2 = scmp.lt.s32.totalorder %s1941_s7, %s1941_s7 }
 0x150   :  { %v2509_v16 = vpop.f32.mrf.mxu0  ;;  %1783 = vtanh.bf16 %v2883_v32 }
 0x151   :  { %1785 = vtanh.bf16 %v2884_v33  ;;  %p1948_p3 = por %p1947_p2, %p1946_p1 }
 0x152   :  { %v2511_v6 = vpop.f32.mrf.mxu0  ;;  %1787 = vtanh.bf16 %v2885_v31 }
 0x153   :  { %p1949_p4 = pnand %p1948_p3, %p1942_p0 }
 0x154   :  { %v2517_v57 = vpop.f32.mrf.mxu0 }
 0x155   :  { %v1766_v54 = vpop.eup %1765 }
 0x156   :  { %v1768_v40 = vpop.eup %1767  ;;  %v2523_v46 = vpop.f32.mrf.mxu0  ;;  %1244 = vmatprep.subr.bf16.mxu1 %v1766_v54 }
 0x157   :  { %v1770_v48 = vpop.eup %1769  ;;  %1245 = vmatpush2.bf16.xpose.msra.mxu1 %v1768_v40 }
 0x158   :  { %v2525_v34 = vpop.f32.mrf.mxu0  ;;  %1246 = vmatprep.subr.bf16.mxu1 %v1770_v48  ;;  %v1772_v54 = vpop.eup %1771 }
 0x159   :  { %v1774_v40 = vpop.eup %1773 }
 0x15a   :  { %v2527_v8 = vpop.f32.mrf.mxu0  ;;  %v1776_v48 = vpop.eup %1775 }
 0x15b   :  { %v1778_v38 = vpop.eup %1777 }
 0x15c   :  { %v2533_v3 = vpop.f32.mrf.mxu0  ;;  %v1780_v63 = vpop.eup %1779 }
 0x15d   :  { %v1057_v43 = vpack.c.bf16 %v2533_v3, %v2525_v34  ;;  %v1782_v37 = vpop.eup %1781  ;;  %v2901_v34 = vld [vmem:[#allocation17_spill] sm:$0xff]  ;;  %v2902_v3 = vld [vmem:[#allocation15_spill] sm:$0xff] }
 0x15e   :  { %v2542_v51 = vpop.f32.mrf.mxu0 }
 0x15f   :  { %1247 = vmatpush2.bf16.xpose.msra.mxu1 %v1772_v54 }
 0x160   :  { %v2544_v15 = vpop.f32.mrf.mxu0  ;;  %1248 = vmatprep.subr.bf16.mxu1 %v1774_v40 }
 0x162   :  { %v2546_v1 = vpop.f32.mrf.mxu0 }
 0x163   :  { %v1059_v5 = vpack.c.bf16 %v2546_v1, %v2542_v51  ;;  %v2899_v51 = vld [vmem:[#allocation10_spill] sm:$0xff] }
 0x164   :  { %v2550_v29 = vpop.f32.mrf.mxu0 }
 0x166   :  { %v2552_v49 = vpop.f32.mrf.mxu0 }
 0x167   :  { %1249 = vmatpush2.bf16.xpose.msra.mxu1 %v1776_v48  ;;  %v1784_v48 = vpop.eup %1783 }
 0x168   :  { %v2557_v27 = vpop.f32.mrf.mxu0  ;;  %1250 = vmatprep.subr.bf16.mxu1 %v1778_v38  ;;  %v2886_v38 = vpack.c.bf16 %v2370_v50, %v2354_v24  ;;  %v1786_v33 = vpop.eup %1785  ;;  %v1049_v50 = vpack.c.bf16 %v2378_v9, %v2359_v22 }
 0x16a   :  { %v2562_v54 = vpop.f32.mrf.mxu0  ;;  %1789 = vtanh.bf16 %v2886_v38 }
 0x16c   :  { %v2564_v40 = vpop.f32.mrf.mxu0 }
 0x16e   :  { %v2566_v60 = vpop.f32.mrf.mxu0 }
 0x16f   :  { %1251 = vmatpush2.bf16.xpose.msra.mxu1 %v1780_v63  ;;  %v2887_v63 = vpack.c.bf16 %v2362_v45, %v2348_v53  ;;  %v2889_v53 = vpack.c.bf16 %v2336_v55, %v2328_v35 }
 0x170   :  { %v606_v11 = vpop.f32.mrf.mxu0  ;;  %1252 = vmatprep.subr.bf16.mxu1 %v1782_v37  ;;  %v1788_v37 = vpop.eup %1787 }
 0x171   :  { %1791 = vtanh.bf16 %v2887_v63 }
 0x172   :  { %v2574_v17 = vpop.f32.mrf.mxu0  ;;  %1793 = vtanh.bf16 %v2888_v28 }
 0x173   :  { %1795 = vtanh.bf16 %v1049_v50 }
 0x174   :  { %v610_v41 = vpop.f32.mrf.mxu0  ;;  %1797 = vtanh.bf16 %v2889_v53 }
 0x175   :  { %1799 = vtanh.bf16 %v1025_v52  ;;  %v1065_v52 = vpack.c.bf16 %v2574_v17, %v2566_v60 }
 0x176   :  { %v614_v32 = vpop.f32.mrf.mxu0 }
 0x177   :  { %1253 = vmatpush2.bf16.xpose.msra.mxu1 %v1784_v48  ;;  %v1046_v48 = vpack.c.bf16 %v2382_v20, %v2366_v0  ;;  %v1043_v0 = vpack.c.bf16 %v2346_v18, %v2334_v61  ;;  %v1019_v61 = vpack.c.bf16 %v2284_v14, %v2276_v10  ;;  %v2615_v18 = vpop.f32.mrf.mxu1  ;;  %v1063_v10 = vpack.c.bf16 %v2564_v40, %v2557_v27  ;;  %v2910_v20 = vld [vmem:[#allocation16_spill] sm:$0xff] }
 0x178   :  { %v616_v39 = vpop.f32.mrf.mxu0  ;;  %1254 = vmatprep.subr.bf16.mxu1 %v1786_v33  ;;  %v1790_v38 = vpop.eup %1789 }
 0x179   :  { %1801 = vtanh.bf16 %v1046_v48  ;;  %v2636_v60 = vpop.f32.mrf.mxu1 }
 0x17a   :  { %v618_v13 = vpop.f32.mrf.mxu0 }
 0x17c   :  { %v620_v24 = vpop.f32.mrf.mxu0 }
 0x17d   :  { %v1069_v33 = vpack.c.bf16 %v620_v24, %v616_v39  ;;  %v1068_v39 = vpack.c.bf16 %v618_v13, %v614_v32 }
 0x17e   :  { %v624_v31 = vpop.f32.mrf.mxu0 }
 0x17f   :  { %1255 = vmatpush2.bf16.xpose.msra.mxu1 %v1788_v37  ;;  %v1792_v28 = vpop.eup %1791 }
 0x180   :  { %v626_v45 = vpop.f32.mrf.mxu0  ;;  %1256 = vmatprep.subr.bf16.mxu1 %v1790_v38  ;;  %v1794_v55 = vpop.eup %1793 }
 0x181   :  { %v1796_v37 = vpop.eup %1795 }
 0x182   :  { %v628_v30 = vpop.f32.mrf.mxu0  ;;  %v1798_v53 = vpop.eup %1797 }
 0x183   :  { %v1071_v9 = vpack.c.bf16 %v628_v30, %v624_v31  ;;  %v1066_v31 = vpack.c.bf16 %v610_v41, %v606_v11  ;;  %v1800_v11 = vpop.eup %1799  ;;  %v1040_v41 = vpack.c.bf16 %v2350_v59, %v2340_v26 }
 0x184   :  { %v630_v22 = vpop.f32.mrf.mxu0 }
 0x185   :  { %v1072_v63 = vpack.c.bf16 %v630_v22, %v626_v45  ;;  %v2643_v22 = vpop.f32.mrf.mxu1 }
 0x186   :  { %v2591_v50 = vpop.f32.mrf.mxu0 }
 0x187   :  { %1803 = vtanh.bf16 %v1072_v63  ;;  %1257 = vmatpush2.bf16.xpose.msra.mxu1 %v1792_v28  ;;  %v1802_v13 = vpop.eup %1801 }
 0x188   :  { %1805 = vtanh.bf16 %v1071_v9  ;;  %v2593_v35 = vpop.f32.mrf.mxu0  ;;  %1258 = vmatprep.subr.bf16.mxu1 %v1794_v55  ;;  %v2631_v9 = vcombine.high %v2372_v56, %v2372_v56  ;;  %v1062_v55 = vpack.c.bf16 %v2562_v54, %v2552_v49  ;;  %v2893_v54 = vld [vmem:[#allocation19_spill] sm:$0xff] }
 0x189   :  { %1807 = vtanh.bf16 %v1069_v33  ;;  %v1037_v33 = vpack.c.bf16 %v2326_v47, %v2322_v58 }
 0x18a   :  { %v2597_v23 = vpop.f32.mrf.mxu0  ;;  %1809 = vtanh.bf16 %v1022_v19 }
 0x18b   :  { %1811 = vtanh.bf16 %v1043_v0 }
 0x18c   :  { %v2603_v24 = vpop.f32.mrf.mxu0  ;;  %1813 = vtanh.bf16 %v1068_v39  ;;  %v1060_v39 = vpack.c.bf16 %v2550_v29, %v2544_v15 }
 0x18d   :  { %1815 = vtanh.bf16 %v1066_v31 }
 0x18e   :  { %v2607_v45 = vpop.f32.mrf.mxu0  ;;  %1817 = vtanh.bf16 %v1019_v61  ;;  %v2891_v61 = vld [vmem:[#allocation13_spill] sm:$0xff] }
 0x18f   :  { %1259 = vmatpush2.bf16.xpose.msra.mxu1 %v1798_v53  ;;  %1819 = vtanh.bf16 %v1040_v41  ;;  %v2890_v53 = vld [vmem:[#allocation14_spill] sm:$0xff] }
 0x190   :  { %v2609_v21 = vpop.f32.mrf.mxu0  ;;  %1590 = vmatprep.subr.bf16.mxu1 %v1796_v37  ;;  %1821 = vtanh.bf16 %v1065_v52  ;;  %v2892_v47 = vpack.c.bf16 %v2890_v53, %v2891_v61 }
 0x191   :  { %1823 = vtanh.bf16 %v1063_v10 }
 0x192   :  { %v2613_v25 = vpop.f32.mrf.mxu0  ;;  %1825 = vtanh.bf16 %v2892_v47 }
 0x193   :  { %1827 = vtanh.bf16 %v1037_v33 }
 0x194   :  { %v2623_v30 = vpop.f32.mrf.mxu0  ;;  %1829 = vtanh.bf16 %v1062_v55  ;;  %v2896_v55 = vld [vmem:[#allocation9_spill] sm:$0xff] }
 0x195   :  { %v1804_v48 = vpop.eup %1803  ;;  %1831 = vtanh.bf16 %v1060_v39 }
 0x196   :  { %v1806_v59 = vpop.eup %1805  ;;  %v2633_v26 = vpop.f32.mrf.mxu0  ;;  %1310 = vmatprep.subr.bf16.mxu0 %v1804_v48  ;;  %1261 = vmatmul.mubr.bf16.vlgmr.msra.gmra.mxu1 %v2372_v56 }
 0x197   :  { %v1808_v17 = vpop.eup %1807  ;;  %1311 = vmatpush1.bf16.xpose.msra.mxu0 %v1806_v59  ;;  %1591 = vmatpush3.bf16.xpose.msra.mxu1 %v1800_v11  ;;  %v2662_v11 = vpop.f32.mrf.mxu1 }
 0x198   :  { %v2638_v27 = vpop.f32.mrf.mxu0  ;;  %1312 = vmatprep.subr.bf16.mxu0 %v1808_v17  ;;  %1592 = vmatprep.subr.bf16.mxu1 %v1802_v13  ;;  %v1810_v28 = vpop.eup %1809  ;;  %v2894_v13 = vld [vmem:[#allocation20_spill] sm:$0xff] }
 0x199   :  { %1606 = vmatprep.mubr.bf16.mxu1 %v2631_v9  ;;  %v1812_v0 = vpop.eup %1811  ;;  %v2668_v29 = vpop.f32.mrf.mxu1  ;;  %v1034_v52 = vpack.c.bf16 %v2894_v13, %v2893_v54 }
 0x19a   :  { %v2641_v40 = vpop.f32.mrf.mxu0  ;;  %v1814_v31 = vpop.eup %1813 }
 0x19b   :  { %v1816_v41 = vpop.eup %1815  ;;  %v2681_v39 = vpop.f32.mrf.mxu1 }
 0x19c   :  { %v2651_v19 = vpop.f32.mrf.mxu0  ;;  %v1818_v10 = vpop.eup %1817 }
 0x19d   :  { %v1820_v17 = vpop.eup %1819 }
 0x19e   :  { %v2660_v58 = vpop.f32.mrf.mxu0  ;;  %v1822_v33 = vpop.eup %1821 }
 0x19f   :  { %1313 = vmatpush1.bf16.xpose.msra.mxu0 %v1814_v31  ;;  %1593 = vmatpush3.bf16.xpose.msra.mxu1 %v1810_v28  ;;  %v2895_v28 = vld [vmem:[#allocation11_spill] sm:$0xff]  ;;  %v1824_v53 = vpop.eup %1823 }
 0x1a0   :  { %v2664_v49 = vpop.f32.mrf.mxu0  ;;  %1314 = vmatprep.subr.bf16.mxu0 %v1816_v41  ;;  %1594 = vmatprep.subr.bf16.mxu1 %v1812_v0  ;;  %v2897_v31 = vpack.c.bf16 %v2895_v28, %v2896_v55  ;;  %v2693_v41 = vpop.f32.mrf.mxu1  ;;  %v2904_v55 = vpack.c.bf16 %v2527_v8, %v2523_v46 }
 0x1a1   :  { %v1826_v54 = vpop.eup %1825 }
 0x1a2   :  { %v2666_v15 = vpop.f32.mrf.mxu0  ;;  %1833 = vtanh.bf16 %v2897_v31 }
 0x1a3   :  { %v1083_v48 = vpack.c.bf16 %v2666_v15, %v2660_v58  ;;  %1835 = vtanh.bf16 %v1034_v52  ;;  %v1828_v52 = vpop.eup %1827  ;;  %v2936_v58 = vpack.c.bf16 %v2641_v40, %v2633_v26  ;;  %v2942_v26 = vpack.c.bf16 %v2613_v25, %v2607_v45 }
 0x1a4   :  { %v2674_v59 = vpop.f32.mrf.mxu0  ;;  %1837 = vtanh.bf16 %v1059_v5 }
 0x1a5   :  { %1839 = vtanh.bf16 %v1057_v43  ;;  %v2903_v43 = vpack.c.bf16 %v2901_v34, %v2902_v3  ;;  %v2906_v3 = vld [vmem:[#allocation7_spill] sm:$0xff] }
 0x1a6   :  { %v2679_v0 = vpop.f32.mrf.mxu0 }
 0x1a7   :  { %1315 = vmatpush1.bf16.xpose.msra.mxu0 %v1822_v33  ;;  %1595 = vmatpush3.bf16.xpose.msra.mxu1 %v1818_v10  ;;  %v1830_v10 = vpop.eup %1829  ;;  %v2898_v33 = vld [vmem:[#allocation12_spill] sm:$0xff] }
 0x1a8   :  { %v2686_v61 = vpop.f32.mrf.mxu0  ;;  %1316 = vmatprep.subr.bf16.mxu0 %v1824_v53  ;;  %1596 = vmatprep.subr.bf16.mxu1 %v1820_v17  ;;  %v2900_v1 = vpack.c.bf16 %v2898_v33, %v2899_v51  ;;  %v2702_v17 = vpop.f32.mrf.mxu1  ;;  %v2905_v53 = vpack.c.bf16 %v2517_v57, %v2509_v16  ;;  %v2912_v16 = vpack.c.bf16 %v2511_v6, %v2507_v12 }
 0x1a9   :  { %v1832_v28 = vpop.eup %1831 }
 0x1aa   :  { %v2691_v47 = vpop.f32.mrf.mxu0  ;;  %1841 = vtanh.bf16 %v2900_v1  ;;  %v1690_v51 = vpop.f32.mrf.mxu1 }
 0x1ab   :  { %1843 = vtanh.bf16 %v2903_v43  ;;  %v2907_v43 = vld [vmem:[#allocation5_spill] sm:$0xff] }
 0x1ac   :  { %v2695_v13 = vpop.f32.mrf.mxu0  ;;  %1845 = vtanh.bf16 %v2904_v55  ;;  %v2908_v46 = vpack.c.bf16 %v2906_v3, %v2907_v43  ;;  %v987_v55 = vpop.f32.mrf.mxu1 }
 0x1ad   :  { %1847 = vtanh.bf16 %v2905_v53  ;;  %v2913_v53 = vpack.c.bf16 %v2503_v44, %v2497_v2  ;;  %v2917_v2 = vpack.c.bf16 %v2499_v36, %v2495_v42  ;;  %v2920_v42 = vld [vmem:[#allocation35_spill] sm:$0xff]  ;;  %v2921_v36 = vld [vmem:[#allocation37_spill] sm:$0xff] }
 0x1ae   :  { %v2700_v5 = vpop.f32.mrf.mxu0  ;;  %1849 = vtanh.bf16 %v2908_v46  ;;  %v1691_v43 = vpop.f32.mrf.mxu1 }
 0x1af   :  { %1317 = vmatpush1.bf16.xpose.msra.mxu0 %v1830_v10  ;;  %1597 = vmatpush3.bf16.xpose.msra.mxu1 %v1826_v54  ;;  %v1097_v46 = vpack.c.bf16 %v1691_v43, %v1690_v51  ;;  %v2918_v51 = vld [vmem:[#allocation34_spill] sm:$0xff] }
 0x1b0   :  { %v2710_v31 = vpop.f32.mrf.mxu0  ;;  %1318 = vmatprep.subr.bf16.mxu0 %v1832_v28  ;;  %1598 = vmatprep.subr.bf16.mxu1 %v1828_v52  ;;  %v1834_v1 = vpop.eup %1833  ;;  %v2909_v52 = vld [vmem:[#allocation18_spill] sm:$0xff] }
 0x1b1   :  { %v1836_v10 = vpop.eup %1835  ;;  %v2911_v38 = vpack.c.bf16 %v2909_v52, %v2910_v20 }
 0x1b2   :  { %v2715_v33 = vpop.f32.mrf.mxu0  ;;  %v1838_v54 = vpop.eup %1837 }
 0x1b3   :  { %v1840_v28 = vpop.eup %1839  ;;  %1851 = vtanh.bf16 %v2911_v38 }
 0x1b4   :  { %v2717_v34 = vpop.f32.mrf.mxu0  ;;  %1853 = vtanh.bf16 %v2912_v16 }
 0x1b5   :  { %1855 = vtanh.bf16 %v2913_v53 }
 0x1b6   :  { %v694_v8 = vpop.f32.mrf.mxu0 }
 0x1b7   :  { %1319 = vmatpush1.bf16.xpose.msra.mxu0 %v1838_v54  ;;  %1599 = vmatpush3.bf16.xpose.msra.mxu1 %v1834_v1  ;;  %v2914_v54 = vld [vmem:[#allocation8_spill] sm:$0xff]  ;;  %v2915_v1 = vld [vmem:[#allocation6_spill] sm:$0xff] }
 0x1b8   :  { %v696_v57 = vpop.f32.mrf.mxu0  ;;  %1320 = vmatprep.subr.bf16.mxu0 %v1840_v28  ;;  %1600 = vmatprep.subr.bf16.mxu1 %v1836_v10  ;;  %v1842_v32 = vpop.eup %1841  ;;  %v2916_v52 = vpack.c.bf16 %v2914_v54, %v2915_v1  ;;  %v2919_v28 = vld [vmem:[#allocation36_spill] sm:$0xff] }
 0x1b9   :  { %v1844_v20 = vpop.eup %1843  ;;  %v990_v10 = vpop.f32.mrf.mxu1  ;;  %v1073_v16 = vpack.c.bf16 %v2919_v28, %v2918_v51  ;;  %v2924_v28 = vld [vmem:[#allocation33_spill] sm:$0xff] }
 0x1ba   :  { %v698_v3 = vpop.f32.mrf.mxu0  ;;  %v1846_v38 = vpop.eup %1845  ;;  %1857 = vtanh.bf16 %v2916_v52  ;;  %v1094_v43 = vpack.c.bf16 %v990_v10, %v987_v55  ;;  %v1070_v55 = vpack.c.bf16 %v2921_v36, %v2920_v42 }
 0x1bb   :  { %v1848_v6 = vpop.eup %1847  ;;  %1859 = vtanh.bf16 %v1097_v46 }
 0x1bc   :  { %v700_v14 = vpop.f32.mrf.mxu0  ;;  %1861 = vtanh.bf16 %v2917_v2  ;;  %v1850_v54 = vpop.eup %1849 }
 0x1bd   :  { %1863 = vtanh.bf16 %v1073_v16  ;;  %v2925_v16 = vld [vmem:[#allocation31_spill] sm:$0xff] }
 0x1be   :  { %v704_v12 = vpop.f32.mrf.mxu0  ;;  %1865 = vtanh.bf16 %v1094_v43 }
 0x1bf   :  { %1321 = vmatpush1.bf16.xpose.msra.mxu0 %v1846_v38  ;;  %1601 = vmatpush3.bf16.xpose.msra.mxu1 %v1842_v32  ;;  %v1093_v32 = vpack.c.bf16 %v700_v14, %v696_v57  ;;  %v1090_v57 = vpack.c.bf16 %v2717_v34, %v2710_v31  ;;  %v1087_v34 = vpack.c.bf16 %v2695_v13, %v2686_v61 }
 0x1c0   :  { %v706_v44 = vpop.f32.mrf.mxu0  ;;  %1322 = vmatprep.subr.bf16.mxu0 %v1848_v6  ;;  %1602 = vmatprep.subr.bf16.mxu1 %v1844_v20  ;;  %v1091_v20 = vpack.c.bf16 %v2693_v41, %v2668_v29  ;;  %v1092_v6 = vpack.c.bf16 %v698_v3, %v694_v8  ;;  %v1088_v29 = vpack.c.bf16 %v2702_v17, %v2681_v39 }
 0x1c1   :  { %v1852_v63 = vpop.eup %1851  ;;  %v1089_v8 = vpack.c.bf16 %v2715_v33, %v2700_v5  ;;  %v1085_v39 = vpack.c.bf16 %v2643_v22, %v2615_v18  ;;  %v1086_v61 = vpack.c.bf16 %v2691_v47, %v2679_v0  ;;  %v1084_v17 = vpack.c.bf16 %v2674_v59, %v2664_v49  ;;  %v2927_v49 = vld [vmem:[#allocation28_spill] sm:$0xff]  ;;  %v2928_v59 = vld [vmem:[#allocation26_spill] sm:$0xff] }
 0x1c2   :  { %v708_v53 = vpop.f32.mrf.mxu0  ;;  %v1854_v38 = vpop.eup %1853  ;;  %v1082_v18 = vpack.c.bf16 %v2662_v11, %v2636_v60  ;;  %v2930_v60 = vpack.c.bf16 %v2651_v19, %v2638_v27  ;;  %v2937_v27 = vpack.c.bf16 %v2623_v30, %v2609_v21  ;;  %v2943_v21 = vpack.c.bf16 %v2603_v24, %v2593_v35 }
 0x1c3   :  { %v1095_v1 = vpack.c.bf16 %v708_v53, %v704_v12  ;;  %v1856_v37 = vpop.eup %1855  ;;  %v2926_v53 = vpack.c.bf16 %v2924_v28, %v2925_v16 }
 0x1c4   :  { %v710_v52 = vpop.f32.mrf.mxu0 }
 0x1c5   :  { %v1096_v46 = vpack.c.bf16 %v710_v52, %v706_v44 }
 0x1c7   :  { %1867 = vtanh.bf16 %v1096_v46  ;;  %1323 = vmatpush1.bf16.xpose.msra.mxu0 %v1854_v38  ;;  %1603 = vmatpush3.bf16.xpose.msra.mxu1 %v1850_v54  ;;  %v2929_v54 = vpack.c.bf16 %v2927_v49, %v2928_v59  ;;  %v2931_v46 = vld [vmem:[#allocation29_spill] sm:$0xff]  ;;  %v2932_v38 = vld [vmem:[#allocation27_spill] sm:$0xff] }
 0x1c8   :  { %1869 = vtanh.bf16 %v1095_v1  ;;  %1324 = vmatprep.subr.bf16.mxu0 %v1856_v37  ;;  %1604 = vmatprep.subr.bf16.mxu1 %v1852_v63  ;;  %v1858_v12 = vpop.eup %1857  ;;  %v2922_v63 = vld [vmem:[#allocation30_spill] sm:$0xff]  ;;  %v2923_v37 = vld [vmem:[#allocation32_spill] sm:$0xff]  ;;  %v2933_v42 = vpack.c.bf16 %v2931_v46, %v2932_v38 }
 0x1c9   :  { %1871 = vtanh.bf16 %v1093_v32  ;;  %v1860_v14 = vpop.eup %1859  ;;  %v1067_v2 = vpack.c.bf16 %v2923_v37, %v2922_v63  ;;  %v2944_v37 = vld [vmem:[#allocation25_spill] sm:$0xff] }
 0x1ca   :  { %v1862_v10 = vpop.eup %1861  ;;  %1873 = vtanh.bf16 %v1070_v55  ;;  %v2934_v55 = vld [vmem:[#allocation38_spill] sm:$0xff] }
 0x1cb   :  { %1875 = vtanh.bf16 %v1091_v20  ;;  %v1864_v44 = vpop.eup %1863  ;;  %v2935_v20 = vpack.c.bf16 %v2484_v4, %v2934_v55 }
 0x1cc   :  { %1877 = vtanh.bf16 %v1092_v6  ;;  %v1866_v41 = vpop.eup %1865  ;;  %v2939_v6 = vld [vmem:[#allocation22_spill] sm:$0xff] }
 0x1cd   :  { %1879 = vtanh.bf16 %v1090_v57  ;;  %v2941_v57 = vpack.c.bf16 %v2488_v62, %v2482_v7  ;;  %v2947_v62 = vpack.c.bf16 %v2597_v23, %v2591_v50 }
 0x1ce   :  { %1881 = vtanh.bf16 %v1067_v2  ;;  %v2945_v2 = vld [vmem:[#allocation23_spill] sm:$0xff] }
 0x1cf   :  { %1325 = vmatpush1.bf16.xpose.msra.mxu0 %v1862_v10  ;;  %1605 = vmatpush3.bf16.xpose.msra.mxu1 %v1858_v12  ;;  %1883 = vtanh.bf16 %v1088_v29  ;;  %v2938_v12 = vld [vmem:[#allocation24_spill] sm:$0xff]  ;;  %v2946_v7 = vpack.c.bf16 %v2944_v37, %v2945_v2 }
 0x1d0   :  { %1608 = vmatprep.subr.bf16.mxu1 %v1860_v14  ;;  %1885 = vtanh.bf16 %v1089_v8  ;;  %v2940_v14 = vpack.c.bf16 %v2938_v12, %v2939_v6  ;;  %v2948_v6 = vld [vmem:[#allocation21_spill] sm:$0xff] }
 0x1d1   :  { %1887 = vtanh.bf16 %v1087_v34 }
 0x1d2   :  { %1889 = vtanh.bf16 %v2926_v53 }
 0x1d3   :  { %1891 = vtanh.bf16 %v1085_v39 }
 0x1d4   :  { %1893 = vtanh.bf16 %v1086_v61 }
 0x1d5   :  { %v1868_v31 = vpop.eup %1867  ;;  %1895 = vtanh.bf16 %v1084_v17 }
 0x1d6   :  { %v1870_v3 = vpop.eup %1869  ;;  %1326 = vmatprep.subr.bf16.mxu0 %v1868_v31  ;;  %1607 = vmatmul.mubr.bf16.vlgmr.msra.gmra.mxu1 %v2631_v9  ;;  %1897 = vtanh.bf16 %v2929_v54  ;;  %v1199_v31 = vpop.permute.xlu0 %1198 }
 0x1d7   :  { %v1872_v51 = vpop.eup %1871  ;;  %1327 = vmatpush2.bf16.xpose.msra.mxu0 %v1870_v3  ;;  %1609 = vmatpush3.bf16.xpose.msra.mxu1 %v1864_v44  ;;  %1899 = vtanh.bf16 %v1082_v18 }
 0x1d8   :  { %1328 = vmatprep.subr.bf16.mxu0 %v1872_v51  ;;  %1610 = vmatprep.subr.bf16.mxu1 %v1866_v41  ;;  %v1874_v5 = vpop.eup %1873  ;;  %1901 = vtanh.bf16 %v1083_v48 }
 0x1d9   :  { %1624 = vmatprep.mubr.bf16.mxu1 %v2631_v9  ;;  %v1876_v13 = vpop.eup %1875  ;;  %1903 = vtanh.bf16 %v2930_v60 }
 0x1da   :  { %v1878_v33 = vpop.eup %1877  ;;  %1905 = vtanh.bf16 %v2933_v42 }
 0x1db   :  { %v1880_v43 = vpop.eup %1879  ;;  %1907 = vtanh.bf16 %v2935_v20 }
 0x1dc   :  { %v1882_v22 = vpop.eup %1881  ;;  %1909 = vtanh.bf16 %v2936_v58 }
 0x1dd   :  { %v1884_v0 = vpop.eup %1883  ;;  %1911 = vtanh.bf16 %v2937_v27 }
 0x1de   :  { %v1886_v47 = vpop.eup %1885  ;;  %1913 = vtanh.bf16 %v2940_v14 }
 0x1df   :  { %1329 = vmatpush2.bf16.xpose.msra.mxu0 %v1878_v33  ;;  %1611 = vmatpush3.bf16.xpose.msra.mxu1 %v1874_v5  ;;  %v1888_v1 = vpop.eup %1887  ;;  %1915 = vtanh.bf16 %v2941_v57 }
 0x1e0   :  { %1330 = vmatprep.subr.bf16.mxu0 %v1880_v43  ;;  %1612 = vmatprep.subr.bf16.mxu1 %v1876_v13  ;;  %v1890_v11 = vpop.eup %1889  ;;  %1917 = vtanh.bf16 %v2942_v26 }
 0x1e1   :  { %v1892_v52 = vpop.eup %1891  ;;  %1919 = vtanh.bf16 %v2943_v21 }
 0x1e2   :  { %v1894_v32 = vpop.eup %1893  ;;  %1921 = vtanh.bf16 %v2946_v7 }
 0x1e3   :  { %v1896_v36 = vpop.eup %1895  ;;  %1923 = vtanh.bf16 %v2947_v62 }
 0x1e4   :  { %v1898_v19 = vpop.eup %1897 }
 0x1e5   :  { %v1900_v15 = vpop.eup %1899 }
 0x1e6   :  { %v1902_v48 = vpop.eup %1901 }
 0x1e7   :  { %1331 = vmatpush2.bf16.xpose.msra.mxu0 %v1886_v47  ;;  %1613 = vmatpush3.bf16.xpose.msra.mxu1 %v1882_v22  ;;  %v1904_v4 = vpop.eup %1903 }
 0x1e8   :  { %1332 = vmatprep.subr.bf16.mxu0 %v1888_v1  ;;  %1614 = vmatprep.subr.bf16.mxu1 %v1884_v0  ;;  %v1906_v30 = vpop.eup %1905 }
 0x1e9   :  { %v1908_v40 = vpop.eup %1907 }
 0x1ea   :  { %v1910_v10 = vpop.eup %1909 }
 0x1eb   :  { %v1912_v63 = vpop.eup %1911 }
 0x1ec   :  { %v1914_v45 = vpop.eup %1913 }
 0x1ed   :  { %v1916_v25 = vpop.eup %1915 }
 0x1ee   :  { %v1918_v35 = vpop.eup %1917 }
 0x1ef   :  { %1333 = vmatpush2.bf16.xpose.msra.mxu0 %v1894_v32  ;;  %1615 = vmatpush3.bf16.xpose.msra.mxu1 %v1890_v11  ;;  %v1920_v24 = vpop.eup %1919 }
 0x1f0   :  { %1334 = vmatprep.subr.bf16.mxu0 %v1896_v36  ;;  %1616 = vmatprep.subr.bf16.mxu1 %v1892_v52  ;;  %v1922_v44 = vpop.eup %1921 }
 0x1f1   :  { %v1924_v29 = vpop.eup %1923 }
 0x1f7   :  { %1335 = vmatpush2.bf16.xpose.msra.mxu0 %v1902_v48  ;;  %1617 = vmatpush3.bf16.xpose.msra.mxu1 %v1898_v19  ;;  %v1965_v19 = vmov 1983009808  }
 0x1f8   :  { %1336 = vmatprep.subr.bf16.mxu0 %v1904_v4  ;;  %1618 = vmatprep.subr.bf16.mxu1 %v1900_v15  ;;  %v1423_v15 = vunpack.c.l.s4 %v1965_v19 }
 0x1fa   :  { %v1424_v48 = vunpack.c.0.s8 %v1423_v15 }
 0x1fc   :  { %v1427_v14 = vsub.s32 %v1424_v48, %v2948_v6 }
 0x1ff   :  { %1337 = vmatpush2.bf16.xpose.msra.mxu0 %v1910_v10  ;;  %1619 = vmatpush3.bf16.xpose.msra.mxu1 %v1906_v30 }
 0x200   :  { %1338 = vmatprep.subr.bf16.mxu0 %v1912_v63  ;;  %1620 = vmatprep.subr.bf16.mxu1 %v1908_v40 }
 0x207   :  { %1339 = vmatpush2.bf16.xpose.msra.mxu0 %v1918_v35  ;;  %1621 = vmatpush3.bf16.xpose.msra.mxu1 %v1914_v45 }
 0x208   :  { %1340 = vmatprep.subr.bf16.mxu0 %v1920_v24  ;;  %1622 = vmatprep.subr.bf16.mxu1 %v1916_v25 }
 0x20f   :  { %1341 = vmatpush2.bf16.xpose.msra.mxu0 %v1924_v29  ;;  %1623 = vmatpush3.bf16.xpose.msra.mxu1 %v1922_v44 }
 0x216   :  { %1343 = vmatmul.mubr.bf16.vlgmr.msra.gmra.mxu0 %v2372_v56  ;;  %1625 = vmatmul.mubr.bf16.vlgmr.msra.gmra.mxu1 %v2631_v9 }
 0x256   :  { %v1262_v50 = vpop.f32.mrf.mxu1 }
 0x257   :  { %v1263_v34 = vadd.f32 %v1262_v50, %v1199_v31 }
 0x258   :  { %v1264_v23 = vpop.f32.mrf.mxu1 }
 0x259   :  { %v1265_v51 = vadd.f32 %v1264_v23, %v1199_v31 }
 0x25a   :  { %v1266_v41 = vpop.f32.mrf.mxu1 }
 0x25c   :  { %v1267_v8 = vpop.f32.mrf.mxu1 }
 0x296   :  { %v1303_v3 = vpop.f32.mrf.mxu1 }
 0x297   :  { %v1304_v39 = vadd.f32 %v1303_v3, %v1263_v34 }
 0x298   :  { %v1305_v5 = vpop.f32.mrf.mxu1 }
 0x299   :  { %v1306_v61 = vadd.f32 %v1305_v5, %v1265_v51  ;;  %v1553_v13 = vmul.f32 -1.442695, %v1304_v39 }
 0x29a   :  { %v1307_v17 = vpop.f32.mrf.mxu1 }
 0x29b   :  { %1925 = vpow2.f32 %v1553_v13  ;;  %v1554_v33 = vmul.f32 -1.442695, %v1306_v61 }
 0x29c   :  { %v1308_v28 = vpop.f32.mrf.mxu1 }
 0x29d   :  { %1927 = vpow2.f32 %v1554_v33 }
 0x2a8   :  { %v1926_v56 = vpop.eup %1925 }
 0x2a9   :  { %v1404_v16 = vadd.f32 1.0, %v1926_v56 }
 0x2aa   :  { %v1928_v9 = vpop.eup %1927 }
 0x2ab   :  { %v1405_v53 = vadd.f32 1.0, %v1928_v9  ;;  %1929 = vrcp.f32 %v1404_v16 }
 0x2ad   :  { %1931 = vrcp.f32 %v1405_v53 }
 0x2b8   :  { %v1930_v43 = vpop.eup %1929 }
 0x2ba   :  { %v1932_v18 = vpop.eup %1931 }
 0x2bb   :  { %v1420_v22 = vcombine.low %v1930_v43, %v1932_v18 }
 0x2bd   :  { %v1428_v26 = vrot.slane %v1420_v22, %v1427_v14 }
 0x2d6   :  { %v1344_v0 = vpop.f32.mrf.mxu0  ;;  %v1385_v47 = vpop.f32.mrf.mxu1 }
 0x2d7   :  { %v1345_v49 = vadd.f32 %v1344_v0, %v1199_v31 }
 0x2d8   :  { %v1346_v59 = vpop.f32.mrf.mxu0  ;;  %v1387_v54 = vpop.f32.mrf.mxu1 }
 0x2d9   :  { %v1347_v1 = vadd.f32 %v1346_v59, %v1199_v31  ;;  %v1386_v60 = vadd.f32 %v1385_v47, %v1345_v49 }
 0x2da   :  { %v1348_v11 = vpop.f32.mrf.mxu0  ;;  %v1389_v52 = vpop.f32.mrf.mxu1 }
 0x2db   :  { %v1555_v32 = vmul.f32 -1.442695, %v1386_v60  ;;  %v1388_v46 = vadd.f32 %v1387_v54, %v1347_v1 }
 0x2dc   :  { %v1349_v38 = vpop.f32.mrf.mxu0  ;;  %v1390_v42 = vpop.f32.mrf.mxu1 }
 0x2dd   :  { %1933 = vpow2.f32 %v1555_v32  ;;  %v1556_v36 = vmul.f32 -1.442695, %v1388_v46 }
 0x2df   :  { %1935 = vpow2.f32 %v1556_v36 }
 0x2ea   :  { %v1934_v55 = vpop.eup %1933 }
 0x2eb   :  { %v1406_v20 = vadd.f32 1.0, %v1934_v55 }
 0x2ec   :  { %v1936_v58 = vpop.eup %1935 }
 0x2ed   :  { %v1407_v27 = vadd.f32 1.0, %v1936_v58  ;;  %1937 = vrcp.f32 %v1406_v20 }
 0x2ef   :  { %1939 = vrcp.f32 %v1407_v27 }
 0x2fa   :  { %v1938_v12 = vpop.eup %1937 }
 0x2fc   :  { %v1940_v4 = vpop.eup %1939 }
 0x2fd   :  { %v1421_v57 = vcombine.low %v1938_v12, %v1940_v4 }
 0x2ff   :  { %v1435_v21 = vrot.slane %v1421_v57, %v1427_v14 }
 0x301   :  { %v1436_v30 = vcombine.low %v1428_v26, %v1435_v21 }
 0x303   :  { %1438 = vst [vmem:[#allocation2] sm:$0xff] %v1436_v30 }
 0x304   :  { %1952 = shalt.err (!%p1949_p4)
}
 0x305   :  { %1448 = dma.vmem_to_hbm [thread:$0]  %s1446_s6, 128, %s2815_s4, [#allocation3]  }
 0x306   :  { %1961 = dma.done.wait [#allocation3], 128  }
 0x307   :  { %1962 = vsyncadd [#allocation3], 4294967168 }
 0x308   :  { %1452 = vsyncpa [#allocation3], 1 }

</bundles_post_ra>
